<compile_context>
chip_gen: v6e
topology: v6e:2x2x1
jax: 0.10.0
libtpu: 0.0.40
codegen_flags: <defaults>
</compile_context>

<pallas_src>
import functools

import jax
import jax.numpy as jnp
from jax.experimental import pallas as pl
from jax.experimental.pallas import tpu as pltpu


def _round_up(x: int, m: int) -> int:
    return ((x + m - 1) // m) * m


@functools.lru_cache(maxsize=1)
def _vmem_limit_bytes() -> int:
    """Generation-aware VMEM limit: ~80% of capacity, capped at 100 MiB."""
    fallback = 64 * 1024 * 1024  # v7x-safe default
    try:
        info = pltpu.get_tpu_info()
        cap = int(getattr(info, "vmem_capacity_bytes", fallback))
    except Exception:
        cap = fallback
    return min(100 * 1024 * 1024, int(cap * 0.8))


def pack_gated_residual_params(w1, b1, wg, bg):
    """Pack weights once (at weight-update time), NOT on the forward hot path.

    Weights are stored pre-transposed as (D_in, D_out).
    Returns (w_cat bf16 (D, 2D), b_cat f32 (1, 2D)).
    """
    w_cat = jnp.concatenate([w1, wg], axis=1).astype(jnp.bfloat16)   # (D, 2D)
    b_cat = jnp.concatenate([b1, bg])[None, :].astype(jnp.float32)   # (1, 2D)
    return w_cat, b_cat


def _gated_residual_kernel(x_ref, wcat_ref, bcat_ref, o_ref):
    """One wide MXU pass (N = 2*D), sigmoid on EUP, gated residual on VPU."""
    d = x_ref.shape[-1]
    x = x_ref[...]                                  # (tm, D)
    xf = x.astype(jnp.float32)
    # [ sb1 | gate_logits ] = x @ [W1 | Wg] + [b1 | bg]   (bf16 in, f32 acc)
    fused = jnp.dot(x.astype(jnp.bfloat16), wcat_ref[...],
                    preferred_element_type=jnp.float32) + bcat_ref[...]
    sb1 = fused[:, :d]                              # (tm, D) f32
    z = fused[:, d:]                                # (tm, D) f32
    # sigmoid(z) = 1 / (1 + exp(-z)): exp + approx reciprocal both on the EUP.
    gate = pl.reciprocal(1.0 + jnp.exp(-z), approx=True)
    o_ref[...] = (xf + gate * sb1).astype(o_ref.dtype)


@jax.jit
def gated_residual_block(x, w_cat, b_cat):
    """x: (..., D). w_cat: (D, 2D) bf16, b_cat: (1, 2D) f32 (see pack_*)."""
    orig_shape = x.shape
    D = orig_shape[-1]
    M = 1
    for s in orig_shape[:-1]:
        M *= s
    x2d = x.reshape(M, D)                           # free reshape, no copy
    itemsize = x2d.dtype.itemsize

    vmem_limit = _vmem_limit_bytes()

    # Resident (constant-index) weight/bias footprint.
    w_bytes = w_cat.size * w_cat.dtype.itemsize
    b_bytes = b_cat.size * b_cat.dtype.itemsize
    single_buffer_weights = w_bytes >= (2 << 20)    # only worth it when non-trivial
    w_buf = 1 if single_buffer_weights else 2
    resident = w_buf * (w_bytes + b_bytes)

    # Per-row VMEM cost: x (2 bufs) + out (2 bufs) + (tm, 2D) f32 fused
    # intermediate + bf16 x copy + slack for compiler temporaries.
    per_row = (2 + 2) * D * itemsize + 8 * D + 2 * D + 4 * D
    budget = max(vmem_limit - resident - (4 << 20), 1 << 20)
    tm_cap = max(8, (budget // per_row) // 8 * 8)

    tm = min(2048, tm_cap, _round_up(M, 8))
    if M > 8:
        # Guarantee >= 2 grid steps so both v7x TensorCores get work.
        tm = min(tm, _round_up(pl.cdiv(M, 2), 8))
        tm = max(tm, 8)
    else:
        tm = M                                      # block == full dim, allowed

    grid = (pl.cdiv(M, tm),)                        # ragged last tile is masked
    D2 = 2 * D

    if single_buffer_weights:
        w_spec = pl.BlockSpec((D, D2), lambda i: (0, 0),
                              pipeline_mode=pl.Buffered(1))
        b_spec = pl.BlockSpec((1, D2), lambda i: (0, 0),
                              pipeline_mode=pl.Buffered(1))
    else:
        w_spec = pl.BlockSpec((D, D2), lambda i: (0, 0))
        b_spec = pl.BlockSpec((1, D2), lambda i: (0, 0))

    cost = pl.CostEstimate(
        flops=4 * M * D * D,                        # (M,D) @ (D,2D) MACs * 2
        transcendentals=M * D,                      # exp for the sigmoid
        bytes_accessed=2 * M * D * itemsize + w_bytes + b_bytes,
    )

    out2d = pl.pallas_call(
        _gated_residual_kernel,
        out_shape=jax.ShapeDtypeStruct((M, D), x.dtype),
        grid_spec=pl.GridSpec(
            grid=grid,
            in_specs=[
                # x: one row tile per grid step (double-buffered by Pallas).
                pl.BlockSpec((tm, D), lambda i: (i, 0)),
                # fused weight / bias: constant block index -> VMEM-resident.
                w_spec,
                b_spec,
            ],
            out_specs=pl.BlockSpec((tm, D), lambda i: (i, 0)),
        ),
        compiler_params=pltpu.CompilerParams(
            dimension_semantics=("parallel",),      # independent row tiles
            vmem_limit_bytes=vmem_limit,
        ),
        cost_estimate=cost,
    )(x2d, w_cat, b_cat)

    return out2d.reshape(orig_shape)


def reference_f32(x, w1, b1, wg, bg):
    """Pure-JAX reference replicating the PyTorch forward exactly (f32)."""
    sb1 = x @ w1 + b1
    gate = jax.nn.sigmoid(x @ wg + bg)
    return x + gate * sb1


def reference_bf16_matmul(x, w1, b1, wg, bg):
    """Reference with bf16 matmul operands / f32 accumulation (kernel's regime)."""
    def mm(a, w):
        return jnp.dot(a.astype(jnp.bfloat16), w.astype(jnp.bfloat16),
                       preferred_element_type=jnp.float32)
    sb1 = mm(x, w1) + b1
    gate = jax.nn.sigmoid(mm(x, wg) + bg)
    return x + gate * sb1


if __name__ == "__main__":
    key = jax.random.PRNGKey(0)
    B, S, D = 2, 8, 32

    kx, k1w, k1b, kgw, kgb = jax.random.split(key, 5)
    x = jax.random.normal(kx, (B, S, D), dtype=jnp.float32)

    # Deterministic "Linear" parameter init (uniform in +/- 1/sqrt(fan_in),
    # like PyTorch's default).  Weights stored as (D_in, D_out).
    bound = 1.0 / jnp.sqrt(D)
    w1 = jax.random.uniform(k1w, (D, D), minval=-bound, maxval=bound,
                            dtype=jnp.float32)
    b1 = jax.random.uniform(k1b, (D,), minval=-bound, maxval=bound,
                            dtype=jnp.float32)
    wg = jax.random.uniform(kgw, (D, D), minval=-bound, maxval=bound,
                            dtype=jnp.float32)
    bg = jax.random.uniform(kgb, (D,), minval=-bound, maxval=bound,
                            dtype=jnp.float32)

    # Pack once, outside the forward hot path.
    w_cat, b_cat = pack_gated_residual_params(w1, b1, wg, bg)

    out = gated_residual_block(x, w_cat, b_cat)
    out = jax.block_until_ready(out)

    ref_b = reference_bf16_matmul(x, w1, b1, wg, bg)
    ref_f = reference_f32(x, w1, b1, wg, bg)

    assert out.shape == (B, S, D)
    # Tight check vs a reference in the same (bf16 matmul) numerical regime.
    assert jnp.allclose(out, ref_b, atol=5e-3, rtol=5e-3), "mismatch vs bf16 reference"
    # Looser check vs the exact f32 PyTorch-equivalent forward.
    assert jnp.allclose(out, ref_f, atol=3e-2, rtol=3e-2), "mismatch vs f32 reference"

    print("KERNEL_OK")
</pallas_src>

<mosaic_0001>
module attributes {stable_mosaic.version = 11 : i64} {
  func.func @_gated_residual_kernel(%arg0: i32, %arg1: memref<8x32xf32, #tpu.memory_space<vmem>>, %arg2: memref<32x64xbf16, #tpu.memory_space<vmem>>, %arg3: memref<1x64xf32, #tpu.memory_space<vmem>>, %arg4: memref<8x32xf32, #tpu.memory_space<vmem>>) attributes {dimension_semantics = [#tpu.dimension_semantics<parallel>], iteration_bounds = array<i64: 2>, scalar_prefetch = 0 : i64, scratch_operands = 0 : i64, tpu.core_type = #tpu.core_type<tc>, window_params = [{transform_indices = @transform_0, window_bounds = array<i64: 8, 32>}, {pipeline_mode = #tpu.pipeline_mode<synchronous>, transform_indices = @transform_1, window_bounds = array<i64: 32, 64>}, {pipeline_mode = #tpu.pipeline_mode<synchronous>, transform_indices = @transform_2, window_bounds = array<i64: 1, 64>}, {transform_indices = @transform_3, window_bounds = array<i64: 8, 32>}]} {
    %c0 = arith.constant 0 : index
    %c0_0 = arith.constant 0 : index
    %0 = vector.load %arg1[%c0, %c0_0] : memref<8x32xf32, #tpu.memory_space<vmem>>, vector<8x32xf32>
    %1 = arith.truncf %0 : vector<8x32xf32> to vector<8x32xbf16>
    %c0_1 = arith.constant 0 : index
    %c0_2 = arith.constant 0 : index
    %2 = vector.load %arg2[%c0_1, %c0_2] : memref<32x64xbf16, #tpu.memory_space<vmem>>, vector<32x64xbf16>
    %cst = arith.constant dense<0.000000e+00> : vector<8x64xf32>
    %3 = tpu.matmul %1, %2, %cst {dimension_numbers = #tpu.dot_dimension_numbers<[1], [0], [0], [1], [0, 0, 1, 1], [], []>} : vector<8x32xbf16>, vector<32x64xbf16>, vector<8x64xf32> -> vector<8x64xf32>
    %c0_3 = arith.constant 0 : index
    %c0_4 = arith.constant 0 : index
    %4 = vector.load %arg3[%c0_3, %c0_4] : memref<1x64xf32, #tpu.memory_space<vmem>>, vector<1x64xf32>
    %5 = vector.broadcast %4 : vector<1x64xf32> to vector<8x64xf32>
    %6 = arith.addf %3, %5 : vector<8x64xf32>
    %7 = vector.extract_strided_slice %6 {offsets = [0, 0], sizes = [8, 32], strides = [1, 1]} : vector<8x64xf32> to vector<8x32xf32>
    %8 = vector.extract_strided_slice %6 {offsets = [0, 32], sizes = [8, 32], strides = [1, 1]} : vector<8x64xf32> to vector<8x32xf32>
    %cst_5 = arith.constant 0.000000e+00 : f32
    %9 = vector.broadcast %cst_5 : f32 to vector<8x32xf32>
    %10 = arith.subf %9, %8 : vector<8x32xf32>
    %11 = math.exp %10 : vector<8x32xf32>
    %cst_6 = arith.constant 1.000000e+00 : f32
    %12 = vector.broadcast %cst_6 : f32 to vector<8x32xf32>
    %13 = arith.addf %12, %11 : vector<8x32xf32>
    %14 = tpu.reciprocal %13 {approx = true} : vector<8x32xf32> -> vector<8x32xf32>
    %15 = arith.mulf %14, %7 : vector<8x32xf32>
    %16 = arith.addf %0, %15 : vector<8x32xf32>
    %c0_7 = arith.constant 0 : index
    %c0_8 = arith.constant 0 : index
    %17 = vector.load %arg4[%c0_7, %c0_8] : memref<8x32xf32, #tpu.memory_space<vmem>>, vector<8x32xf32>
    tpu.vector_store %arg4[%c0_7, %c0_8], %16 {strides = array<i32>} : memref<8x32xf32, #tpu.memory_space<vmem>>, vector<8x32xf32>,
    return
  }
  func.func @transform_0(%arg0: i32) -> (i32, i32) {
    %c0_i32 = arith.constant 0 : i32
    %c0_i32_0 = arith.constant 0 : i32
    return %arg0, %c0_i32 : i32, i32
  }
  func.func @transform_1(%arg0: i32) -> (i32, i32) {
    %c0_i32 = arith.constant 0 : i32
    %c0_i32_0 = arith.constant 0 : i32
    %c0_i32_1 = arith.constant 0 : i32
    return %c0_i32, %c0_i32_0 : i32, i32
  }
  func.func @transform_2(%arg0: i32) -> (i32, i32) {
    %c0_i32 = arith.constant 0 : i32
    %c0_i32_0 = arith.constant 0 : i32
    %c0_i32_1 = arith.constant 0 : i32
    return %c0_i32, %c0_i32_0 : i32, i32
  }
  func.func @transform_3(%arg0: i32) -> (i32, i32) {
    %c0_i32 = arith.constant 0 : i32
    %c0_i32_0 = arith.constant 0 : i32
    return %arg0, %c0_i32 : i32, i32
  }
}

</mosaic_0001>

<bundles_post_ra>
// kernel: gated_residual_block.1
= control target key start
LH: loop header
LB: loop body
LE: loop exit
PB: predicated region body
PF: predicated region fallthrough
CT: control target
= control target key end

     0   :  { %8 = vsyncpa [#allocation3], 0  ;;  %s795_s0 = inlined_call_operand.hbm [shape: f32[16,32], index: 0, kind: input, shape index: {}]   ;;  %s796_s1 = inlined_call_operand.hbm [shape: bf16[32,64], index: 1, kind: input, shape index: {}]   ;;  %s797_s2 = inlined_call_operand.vmem [shape: f32[1,64], index: 2, kind: input, shape index: {}]   ;;  %s798_s3 = inlined_call_operand.hbm [shape: f32[16,32], index: 3, kind: output, shape index: {}]  }
   0x1   :  { %10 = vsyncpa [#allocation3 + $0x1], 0 }
   0x2   :  { %11 = vsyncpa [#allocation6], 0 }
   0x3   :  { %12 = vsyncpa [#allocation4], 0 }
   0x4   :  { %14 = vsyncpa [#allocation4 + $0x1], 0  ;;  %s632_s12 = smov 0   ;;  %s634_s13 = smov 0  }
   0x5   :  { %s636_s14 = smov 0   ;;  %s638_s15 = smov 0  }
   0x6 LB: > { %s653_s16 = sadd.s32 4294967295, %s601_s15   ;;  %s381_s17 = sadd.s32 4294967294, %s601_s15   ;;  %s601_s15 = sphi %s638_s15, %s820_s15   ;;  %s597_s14 = sphi %s636_s14, %s819_s14   ;;  %s593_s13 = sphi %s634_s13, %s818_s13   ;;  %s589_s12 = sphi %s632_s12, %s817_s12  }
   0x7   : > { %p40_p0 = scmp.ne.s32.totalorder %s593_s13, %s589_s12  ;;  %p799_p1 = scmp.eq.s32.totalorder %s653_s16, 0 }
   0x8   : > { %p112_p3 = scmp.eq.s32.totalorder %s381_s17, 1  ;;  %p382_p5 = scmp.ge.s32.totalorder %s601_s15, 1 }
   0x9   : > { %p662_p4 = por %p799_p1, %p40_p0  ;;  %p119_p7 = scmp.lt.s32.totalorder %s601_s15, 3 }
   0xa   : > { %p667_p6 = por %p112_p3, %p40_p0  ;;  %s603_s21 = smov [#allocation5]  }
   0xb   : > { %s803_s18 = scalar_select %p662_p4, 1, 0 }
   0xc   : > { %s804_s19 = scalar_select %p667_p6, 1, 0 }
   0xd   : > { %p672_p8 = pnand %p382_p5, %p119_p7  ;;  %s131_s22 = sshll.u32 %s603_s21, 4  ;;  %s132_s22 = int_to_ptr.vmem [resolvable:$true] %s131_s22 }
   0xe   : > { %s686_s24 = sadd.s32 1, %s601_s15   ;;  %s27_s25 = sadd.s32 1, %s597_s14 }
   0xf   : > { %s805_s20 = scalar_select %p672_p8, 1, 0 }
  0x10   : > { %p418_p9 = pneg %p672_p8  ;;  %s24_s26 = ssub.s32 %s601_s15, %s686_s24 }
  0x11   : > { %s490_s27 = scalar_lea.vmem %s132_s22, 256  ;;  %p498_p5 = scmp.lt.s32.totalorder %s132_s22, %s132_s22 }
  0x12   : > { %p681_p11 = pnand %p418_p9, %p799_p1  ;;  %p491_p13 = scmp.ne.s32.totalorder %s132_s22, %s490_s27 }
  0x13   : > { %p499_p7 = scmp.lt.s32.totalorder %s490_s27, %s490_s27 }
  0x14   : > { %p481_p12 = pneg %p681_p11 }
  0x15   : > { %p500_p10 = por %p499_p7, %p498_p5 }
  0x16   : > { %p493_p0 = pnand %p491_p13, %p481_p12 }
  0x18   : > { %p494_p3 = pneg %p493_p0 }
  0x1a   : > { %p501_p2 = pnand %p500_p10, %p494_p3 }
  0x1c   : > { %504 = shalt.err (!%p501_p2)
}
  0x1d   : > { %s604_s28 = smov 64   ;;  %s605_s29 = smov 4  }
  0x1e   : > { %421 = dma.hbm_to_vmem [thread:$0]  (!%p681_p11), %s796_s1, 256, %s132_s22, [#allocation6], %s604_s28, %s604_s28, %s605_s29  }
  0x1f   : > { %p25_p9 = scmp.eq.s32.totalorder %s24_s26, 0  ;;  %p34_p12 = scmp.ne.s32.totalorder %s597_s14, %s593_s13 }
  0x20   : > { %p35_p10 = scmp.eq.s32.totalorder %s601_s15, 0  ;;  %p431_p2 = scmp.lt.s32.totalorder %s601_s15, 2 }
  0x21   : > { %s703_s5 = scalar_select %p25_p9, %s597_s14, %s27_s25  }
  0x22   : > { %p36_p13 = por %p35_p10, %p34_p12  ;;  %p807_p0 = scmp.eq.s32.totalorder %s653_s16, 1 }
  0x23   : > { %s148_s7 = sand.u32 1, %s597_s14   ;;  %s386_s8 = sshll.u32 %s601_s15, 7 }
  0x24   : > { %p707_p3 = por %p807_p0, %p34_p12  ;;  %s385_s9 = sshll.u32 %s148_s7, 3 }
  0x25   : > { %s716_s17 = scalar_lea.hbm %s795_s0, %s386_s8  ;;  %s152_s21 = scalar_lea.vmem [#allocation2], %s385_s9 }
  0x26   : > { %s808_s6 = scalar_select %p707_p3, 1, 0 }
  0x27   : > { %s159_s22 = sshll.u32 %s152_s21, 4  ;;  %p718_p11 = pnand %p431_p2, %p36_p13  ;;  %s160_s22 = int_to_ptr.vmem [resolvable:$true] %s159_s22 }
  0x28   : > { %s149_s25 = scalar_lea.sflag [#allocation3], %s148_s7  ;;  %s505_s26 = scalar_lea.hbm %s716_s17, 128 }
  0x29   : > { %p506_p5 = scmp.ne.s32.totalorder %s716_s17, %s505_s26  ;;  %p507_p7 = pneg %p718_p11 }
  0x2a   : > { %s510_s29 = scalar_lea.hbm %s795_s0, 256  ;;  %p511_p10 = scmp.lt.s32.totalorder %s716_s17, %s795_s0 }
  0x2b   : > { %p508_p9 = pnand %p507_p7, %p506_p5  ;;  %p512_p2 = scmp.lt.s32.totalorder %s510_s29, %s505_s26 }
  0x2d   : > { %p509_p12 = pneg %p508_p9  ;;  %p513_p13 = por %p512_p2, %p511_p10 }
  0x2f   : > { %p514_p0 = pnand %p513_p13, %p509_p12 }
  0x31   : > { %517 = shalt.err (!%p514_p0)
}
  0x32   : > { %s518_s8 = scalar_lea.vmem %s160_s22, 128  ;;  %s606_s7 = smov [#allocation2]  }
  0x33   : > { %p519_p1 = scmp.ne.s32.totalorder %s160_s22, %s518_s8  ;;  %s523_s9 = sshll.u32 %s606_s7, 4  ;;  %s524_s9 = int_to_ptr.vmem [resolvable:$false] %s523_s9 }
  0x34   : > { %s525_s10 = scalar_lea.vmem %s524_s9, 256  ;;  %p526_p5 = scmp.lt.s32.totalorder %s160_s22, %s524_s9 }
  0x35   : > { %p521_p6 = pnand %p519_p1, %p507_p7  ;;  %p527_p9 = scmp.lt.s32.totalorder %s525_s10, %s518_s8 }
  0x37   : > { %p522_p3 = pneg %p521_p6  ;;  %p528_p4 = por %p527_p9, %p526_p5 }
  0x39   : > { %p529_p8 = pnand %p528_p4, %p522_p3 }
  0x3b   : > { %532 = shalt.err (!%p529_p8)
}
  0x3c   : > { %425 = dma.hbm_to_vmem [thread:$0]  (!%p718_p11), %s716_s17, 128, %s160_s22, %s149_s25  }
  0x3d   : > { %p810_p12 = scmp.ne.s32.totalorder %s805_s20, 0 }
  0x3e   : > { %s739_s11 = sand.u32 (!%p810_p12), 1, %s593_s13   ;;  %p811_p1 = scmp.ne.s32.totalorder (!%p810_p12), %s803_s18, 0 }
  0x3f   : > { %168 = sbr.rel (%p810_p12) target bundleno = 523 (0x20b), region = 32  ;;  %s388_s21 = sshll.u32 (!%p810_p12), %s739_s11, 3 }
  0x40   : > { %s171_s26 = scalar_lea.sflag (!%p810_p12), [#allocation3], %s739_s11  ;;  %s174_s27 = scalar_lea.vmem (!%p810_p12), [#allocation2], %s388_s21 }
  0x44   : > { %576 = dma.done.wait (%p811_p1), %s171_s26, 128  }
  0x45   : > { %578 = vsyncadd (%p811_p1), %s171_s26, 4294967168  ;;  %p812_p4 = scmp.eq.s32.totalorder %s653_s16, 0 }
  0x47   : > { %580 = dma.done.wait (%p812_p4), [#allocation6], 256   ;;  %p813_p6 = pmov %p812_p4 }
  0x48   : > { %v607_v0 = vmov 0.0   ;;  %vm608_vm0 = vmmov 0   ;;  %v473_v1 = vld [vmem:[#allocation5 + $0x8] sm:$0xff]   ;;  %v474_v2 = vld [vmem:[#allocation5] sm:$0xff]   ;;  %v202_v3 = vld [vmem:[%s174_s27] sm:$0xff]  ;;  %vm227_vm1 = vcmask 261120  }
  0x49   : > { %582 = vsyncadd (%p813_p6), [#allocation6], 4294967040  ;;  %402 = vmatprep.subr.bf16.mxu0 %v607_v0  ;;  %406 = vmatprep.mubr.msk.bf16.mxu0 %vm608_vm0, %v607_v0  ;;  %v203_v4 = vpack.c.bf16 %v202_v3, %v202_v3  ;;  %v391_v5 = vld [vmem:[%s797_s2] ss:$0 sm:$0xff]  ;;  %s609_s17 = smov 32   ;;  %s610_s22 = smov 96  }
  0x4a   : > { %403 = vmatpush3.bf16.msra.mxu0 %v473_v1  ;;  %s396_s23 = sshll.u32 %s653_s16, 7  ;;  %s200_s25 = scalar_lea.vmem [#allocation7], %s388_s21 }
  0x4b   : > { %404 = vmatprep.subr.bf16.mxu0 %v607_v0  ;;  %s301_s28 = sshll.u32 %s200_s25, 4  ;;  %s299_s4 = scalar_lea.hbm %s798_s3, %s396_s23  ;;  %s302_s28 = int_to_ptr.vmem [resolvable:$true] %s301_s28 }
  0x4c   : > { %s288_s8 = scalar_lea.sflag [#allocation4], %s739_s11  ;;  %s533_s7 = scalar_lea.vmem %s302_s28, 128 }
  0x4d   : > { %p534_p8 = scmp.ne.s32.totalorder %s302_s28, %s533_s7  ;;  %p814_p3 = scmp.ne.s32.totalorder %s808_s6, 0 }
  0x4e   : > { %405 = vmatpush3.bf16.msra.mxu0 %v474_v2  ;;  %s611_s9 = smov [#allocation7]  }
  0x4f   : > { %p535_p11 = pnand %p534_p8, %p814_p3  ;;  %s537_s16 = sshll.u32 %s611_s9, 4  ;;  %s538_s16 = int_to_ptr.vmem [resolvable:$false] %s537_s16 }
  0x50   : > { %s539_s10 = scalar_lea.vmem %s538_s16, 256  ;;  %p540_p10 = scmp.lt.s32.totalorder %s302_s28, %s538_s16 }
  0x51   : > { %407 = vmatmul.mubr.msk.bf16.vlgmr.msra.gmra.mxu0 %vm227_vm1, %v203_v4  ;;  %p536_p7 = pneg %p535_p11  ;;  %p541_p2 = scmp.lt.s32.totalorder %s539_s10, %s533_s7 }
  0x53   : > { %p542_p13 = por %p541_p2, %p540_p10 }
  0x55   : > { %p543_p0 = pnand %p542_p13, %p536_p7 }
 0x111   : > { %v265_v6 = vpop.f32.mrf.mxu0 }
 0x112   : > { %v266_v7 = vadd.f32 %v391_v5, %v265_v6 }
 0x113   : > { %v408_v8 = vpop.f32.mrf.mxu0 }
 0x114   : > { %277 = vrot.lane.b32.xlu0 %v266_v7, %s609_s17  ;;  %v271_v11 = vsub.f32 0.0, %v266_v7 }
 0x115   : > { %v268_v9 = vpop.f32.mrf.mxu0 }
 0x116   : > { %v272_v12 = vmul.f32 1.442695, %v271_v11 }
 0x117   : > { %v409_v10 = vpop.f32.mrf.mxu0 }
 0x118   : > { %475 = vpow2.f32 %v272_v12 }
 0x125   : > { %v476_v13 = vpop.eup %475 }
 0x126   : > { %v274_v14 = vadd.f32 1.0, %v476_v13 }
 0x128   : > { %477 = vrcp.f32 %v274_v14 }
 0x135   : > { %v478_v15 = vpop.eup %477 }
 0x186   : > { %v278_v16 = vpop.permute.xlu0 %277 }
 0x187   : > { %v280_v17 = vmul.f32 %v478_v15, %v278_v16 }
 0x189   : > { %282 = vrot.lane.b32.xlu0 %v280_v17, %s610_s22 }
 0x1fb   : > { %v283_v18 = vpop.permute.xlu0 %282 }
 0x1fc   : > { %v285_v19 = vadd.f32 %v283_v18, %v202_v3 }
 0x1fe   : > { %286 = vst.msk [vmem:[%s200_s25] sm:$0xff] %vm227_vm1, %v285_v19 }
 0x1ff   : > { %546 = shalt.err (!%p543_p0)
}
 0x200   : > { %s547_s21 = scalar_lea.hbm %s299_s4, 128  ;;  %s551_s27 = scalar_lea.hbm %s798_s3, 256 }
 0x201   : > { %p548_p5 = scmp.ne.s32.totalorder %s299_s4, %s547_s21  ;;  %p552_p1 = scmp.lt.s32.totalorder %s299_s4, %s798_s3 }
 0x202   : > { %p553_p4 = scmp.lt.s32.totalorder %s551_s27, %s547_s21 }
 0x203   : > { %p549_p9 = pnand %p548_p5, %p814_p3 }
 0x204   : > { %p554_p6 = por %p553_p4, %p552_p1 }
 0x205   : > { %p550_p12 = pneg %p549_p9 }
 0x207   : > { %p555_p8 = pnand %p554_p6, %p550_p12 }
 0x209   : > { %558 = shalt.err (!%p555_p8)
}
 0x20a   : > { %416 = dma.vmem_to_hbm [thread:$0]  (%p814_p3), %s302_s28, 128, %s299_s4, %s288_s8  }
 0x20b PF: > { %s313_s17 = sand.u32 1, %s589_s12   ;;  %p815_p11 = scmp.ne.s32.totalorder %s804_s19, 0 }
 0x20c   : > { %p816_p7 = scmp.ge.s32.totalorder %s601_s15, 2  ;;  %s314_s22 = scalar_lea.sflag [#allocation4], %s313_s17 }
 0x20e   : > { %p427_p10 = pnand %p816_p7, %p815_p11 }
 0x210   : > { %p428_p2 = pneg %p427_p10 }
 0x212   : > { %584 = dma.done.wait (%p428_p2), %s314_s22, 128  }
 0x213   : > { %586 = vsyncadd (%p428_p2), %s314_s22, 4294967168  ;;  %p17_p13 = scmp.ge.s32.totalorder %s686_s24, 4   ;;  %s817_s12 = smov %s593_s13 }
 0x214   : > { %s818_s13 = smov %s597_s14  ;;  %s819_s14 = smov %s703_s5 }
 0x215   : > { %s820_s15 = smov %s686_s24  ;;  %19 = sbr.rel (!%p17_p13) target bundleno = 6 (0x6), region = 81 }
 0x21a   :  { %319 = vsyncpa [#allocation3], 1 }
 0x21b   :  { %321 = vsyncpa [#allocation3 + $0x1], 1 }
 0x21c   :  { %322 = vsyncpa [#allocation6], 1 }
 0x21d   :  { %323 = vsyncpa [#allocation4], 1 }
 0x21e   :  { %325 = vsyncpa [#allocation4 + $0x1], 1 }

</bundles_post_ra>
